<compile_context>
chip_gen: v7x
topology: tpu7x:2x2x1
jax: 0.10.0
libtpu: 0.0.40
codegen_flags: <defaults>
</compile_context>

<pallas_src>
import jax
import jax.numpy as jnp
from jax.experimental import pallas as pl
from jax.experimental.pallas import tpu as pltpu


def _round_up(x: int, m: int) -> int:
    return ((x + m - 1) // m) * m


def _hw_plan():
    """Return (tile-edge cap, per-buffer byte budget) for this TPU generation."""
    kind = ""
    try:
        kind = jax.devices()[0].device_kind.lower()
    except Exception:
        pass
    if ("v6" in kind) or ("v7" in kind):
        # 32 MiB scoped-VMEM default; >=1.3 TB/s HBM rewards bigger tiles.
        return 1024, 4 << 20
    # v5e & unknown chips: 16 MiB scoped-VMEM default; 512-edge tiles already
    # sit near the HBM roofline there.
    return 512, 2 << 20


def _transpose_kernel(x_ref, o_ref):
    # x_ref: (bt, tm, tn) slab in VMEM; o_ref: (bt, tn, tm) slab in VMEM.
    # Pure XLU work; lane-dense on both sides (tm, tn are multiples of 128).
    o_ref[...] = jnp.swapaxes(x_ref[...], -2, -1)


def transpose_x(x: jax.Array) -> jax.Array:
    """Swap the last two axes of x (rank >= 2). Matches torch.transpose(x, -2, -1)."""
    if x.ndim < 2:
        raise ValueError("transpose_x requires rank >= 2")

    *lead, M, N = x.shape
    B = 1
    for d in lead:
        B *= d

    # Degenerate / tiny / narrow planes: use XLA's native transpose.  A
    # standalone Pallas kernel with min(M, N) < 128 is dominated by
    # lane-sparse masked stores and per-step overhead (the coconat 16x32
    # call-site lands here).
    if B == 0 or M == 0 or N == 0 or min(M, N) < 128:
        return jnp.swapaxes(x, -2, -1)

    x_flat = x.reshape(B, M, N)
    itemsize = jnp.dtype(x.dtype).itemsize
    cap, buf_budget = _hw_plan()

    # Tile edges: multiples of 128 that cover the dims (rounded up), clamped to
    # the generation cap.  Partial edge blocks are masked by Pallas, so tiles
    # never collapse to 128 for awkward dims like 640 / 500.
    tm = min(cap, _round_up(M, 128))
    tn = min(cap, _round_up(N, 128))
    # Keep a single tile within the per-buffer budget (only matters for
    # unusually wide dtypes).
    while tm * tn * itemsize > buf_budget and max(tm, tn) > 128:
        if tm >= tn:
            tm = max(128, (tm // 2) // 128 * 128)
        else:
            tn = max(128, (tn // 2) // 128 * 128)

    # Fold batch planes into one block while staying inside the budget, to
    # amortize per-grid-step overhead for small planes.  No divisor search:
    # a partial last batch block is masked by Pallas.
    bt = int(max(1, min(B, buf_budget // (tm * tn * itemsize))))

    grid = (pl.cdiv(B, bt), pl.cdiv(M, tm), pl.cdiv(N, tn))

    out = pl.pallas_call(
        _transpose_kernel,
        out_shape=jax.ShapeDtypeStruct((B, N, M), x.dtype),
        grid_spec=pltpu.PrefetchScalarGridSpec(
            num_scalar_prefetch=0,
            grid=grid,
            in_specs=[pl.BlockSpec((bt, tm, tn), lambda b, i, j: (b, i, j))],
            # Transposed output block; tile indices swap along the plane axes.
            out_specs=pl.BlockSpec((bt, tn, tm), lambda b, i, j: (b, j, i)),
        ),
        compiler_params=pltpu.CompilerParams(
            dimension_semantics=("parallel", "parallel", "parallel"),
        ),
    )(x_flat)

    return out.reshape(*lead, N, M)


if __name__ == "__main__":
    key = jax.random.PRNGKey(0)
    k1, k2, k3, k4 = jax.random.split(key, 4)

    tests = [
        # 1) coconat-scale tiny planes (batch=2, channels=4, 16x32): routed to
        #    XLA's native transpose (lane-sparse output makes Pallas a loss).
        jax.random.normal(k1, (2, 4, 16, 32), dtype=jnp.float32),
        # 2) 128-aligned M, awkward N=640: tiled Pallas path; no 128-edge
        #    collapse (full 640 tile on v6e/v7x, 512 + masked edge on v5e).
        jax.random.normal(k2, (1, 256, 640), dtype=jnp.float32),
        # 3) bf16 small aligned planes: tiled Pallas path with batch folding
        #    (both planes in a single grid step).
        jax.random.normal(k3, (2, 256, 128), dtype=jnp.float32).astype(jnp.bfloat16),
        # 4) mixed alignment (N=500 not a multiple of 128): tiled Pallas path
        #    with a masked edge block along N.
        jax.random.normal(k4, (2, 384, 500), dtype=jnp.float32),
    ]

    for x in tests:
        y = transpose_x(x)
        jax.block_until_ready(y)
        y_ref = jnp.swapaxes(x, -2, -1)
        assert y.shape == y_ref.shape, (y.shape, y_ref.shape)
        assert y.dtype == x.dtype, (y.dtype, x.dtype)
        assert jnp.array_equal(y, y_ref), "mismatch vs reference transpose"

    print("KERNEL_OK")
</pallas_src>

<mosaic_0001>
module attributes {stable_mosaic.version = 11 : i64} {
  func.func @_transpose_kernel(%arg0: i32, %arg1: i32, %arg2: i32, %arg3: memref<1x256x512xf32, #tpu.memory_space<vmem>>, %arg4: memref<1x512x256xf32, #tpu.memory_space<vmem>>) attributes {dimension_semantics = [#tpu.dimension_semantics<parallel>, #tpu.dimension_semantics<parallel>, #tpu.dimension_semantics<parallel>], iteration_bounds = array<i64: 1, 1, 2>, scalar_prefetch = 0 : i64, scratch_operands = 0 : i64, tpu.core_type = #tpu.core_type<tc>, window_params = [{transform_indices = @transform_0, window_bounds = array<i64: 1, 256, 512>}, {transform_indices = @transform_1, window_bounds = array<i64: 1, 512, 256>}]} {
    %c0 = arith.constant 0 : index
    %c0_0 = arith.constant 0 : index
    %c0_1 = arith.constant 0 : index
    %0 = vector.load %arg3[%c0, %c0_0, %c0_1] : memref<1x256x512xf32, #tpu.memory_space<vmem>>, vector<1x256x512xf32>
    %1 = tpu.transpose %0, [0, 2, 1] : vector<1x256x512xf32> -> vector<1x512x256xf32>
    %c0_2 = arith.constant 0 : index
    %c0_3 = arith.constant 0 : index
    %c0_4 = arith.constant 0 : index
    %2 = vector.load %arg4[%c0_2, %c0_3, %c0_4] : memref<1x512x256xf32, #tpu.memory_space<vmem>>, vector<1x512x256xf32>
    tpu.vector_store %arg4[%c0_2, %c0_3, %c0_4], %1 {strides = array<i32>} : memref<1x512x256xf32, #tpu.memory_space<vmem>>, vector<1x512x256xf32>,
    return
  }
  func.func @transform_0(%arg0: i32, %arg1: i32, %arg2: i32) -> (i32, i32, i32) {
    %c0_i32 = arith.constant 0 : i32
    return %arg0, %arg1, %arg2 : i32, i32, i32
  }
  func.func @transform_1(%arg0: i32, %arg1: i32, %arg2: i32) -> (i32, i32, i32) {
    %c0_i32 = arith.constant 0 : i32
    return %arg0, %arg2, %arg1 : i32, i32, i32
  }
}

</mosaic_0001>

<bundles_post_ra>
// kernel: tpu_custom_call.1
= control target key start
LH: loop header
LB: loop body
LE: loop exit
PB: predicated region body
PF: predicated region fallthrough
CT: control target
= control target key end

     0   :  { %6 = vsyncpa [#allocation3], 0  ;;  %s1490_s0 = inlined_call_operand.hbm [shape: f32[1,256,640], index: 0, kind: input, shape index: {}]   ;;  %s1491_s1 = inlined_call_operand.hbm [shape: f32[1,640,256], index: 1, kind: output, shape index: {}]  }
   0x1   :  { %8 = vsyncpa [#allocation3 + $0x1], 0 }
   0x2   :  { %9 = vsyncpa [#allocation4], 0 }
   0x3   :  { %11 = vsyncpa [#allocation4 + $0x1], 0  ;;  %s1038_s6 = smov 0   ;;  %s1040_s7 = smov 0  }
   0x4   :  { %s1042_s8 = smov 0   ;;  %s1044_s9 = smov 0  }
   0x5   :  { %s1046_s10 = smov 0   ;;  %s1048_s11 = smov 0  }
   0x6 LB: > { %s819_s12 = sadd.s32 4294967295, %s1020_s11   ;;  %s820_s13 = sadd.s32 4294967294, %s1020_s11   ;;  %s1020_s11 = sphi %s1048_s11, %s17_s11   ;;  %s1016_s10 = sphi %s1046_s10, %s1502_s10   ;;  %s1012_s9 = sphi %s1044_s9, %s1501_s9   ;;  %s1008_s8 = sphi %s1042_s8, %s1500_s8   ;;  %s1004_s7 = sphi %s1040_s7, %s1499_s7   ;;  %s1000_s6 = sphi %s1038_s6, %s1498_s6  }
   0x7   : > { %s29_s14 = sadd.s32 1, %s1016_s10  ;;  %s47_s15 = sadd.s32 1, %s1008_s8 }
   0x8   : > { %p30_p0 = scmp.ge.s32.totalorder %s29_s14, 2  ;;  %p54_p1 = scmp.ne.s32.totalorder %s1008_s8, %s1004_s7 }
   0x9   : > { %p55_p2 = scmp.eq.s32.totalorder %s1020_s11, 0  ;;  %p60_p3 = scmp.ne.s32.totalorder %s1004_s7, %s1000_s6 }
   0xa   : > { %s1504_s14 = smov (%p30_p0, %s29_s14), 0  ;;  %p61_p5 = scmp.eq.s32.totalorder %s819_s12, 0 }
   0xb   : > { %p56_p4 = por %p55_p2, %p54_p1  ;;  %s43_s16 = ssub.s32 %s1016_s10, %s1504_s14 }
   0xc   : > { %p88_p6 = scmp.eq.s32.totalorder %s819_s12, 1  ;;  %p45_p7 = scmp.eq.s32.totalorder %s43_s16, 0 }
   0xd   : > { %p1081_p8 = por %p61_p5, %p60_p3  ;;  %p94_p10 = scmp.eq.s32.totalorder %s820_s13, 1 }
   0xe   : > { %p1085_p9 = por %p88_p6, %p54_p1  ;;  %p1492_p12 = scmp.ge.s32.totalorder %s1020_s11, 2 }
   0xf   : > { %s1090_s19 = scalar_select %p45_p7, %s1008_s8, %s47_s15  }
  0x10   : > { %p1092_p11 = por %p94_p10, %p60_p3  ;;  %110 = sbr.rel (%p1492_p12) target bundleno = 58 (0x3a), region = 16 }
  0x12   : > { %s1495_s20 = scalar_select %p1092_p11, 1, 0 }
  0x17   : > { %113 = sbr.rel (!%p56_p4) target bundleno = 58 (0x3a), region = 20  ;;  %s114_s21 = sand.u32 (%p56_p4), 1, %s1008_s8  }
  0x18   : > { %s824_s22 = sshll.u32 (%p56_p4), %s1016_s10, 2  ;;  %s823_s23 = sshll.u32 (%p56_p4), %s114_s21, 10 }
  0x19   : > { %s121_s24 = ssub.s32 (%p56_p4), 5, %s824_s22  ;;  %s1107_s27 = scalar_lea.sflag (%p56_p4), [#allocation3], %s114_s21 }
  0x1a   : > { %p122_p13 = scmp.lt.s32.totalorder (%p56_p4), %s121_s24, 4  ;;  %s118_s28 = scalar_lea.vmem (%p56_p4), [#allocation2], %s823_s23 }
  0x1e   : > { %s1506_s24 = smov (!%p122_p13, %s121_s24), 4 }
  0x1f   : > { %s1104_s25 = sshll.u32 %s1506_s24, 12 }
  0x20   : > { %s126_s26 = ssub.s32 16384, %s1104_s25 }
  0x21   : > { %127 = vsyncadd %s1107_s27, %s126_s26  ;;  %p826_p0 = scmp.ne.s32.totalorder %s1104_s25, 0  ;;  %s845_s29 = sshll.u32 %s1016_s10, 9 }
  0x22   : > { %s1115_s3 = scalar_lea.hbm %s1490_s0, %s845_s29  ;;  %s828_s4 = sshll.u32 %s1506_s24, 3 }
  0x23   : > { %s137_s5 = sshll.u32 %s118_s28, 4  ;;  %s910_s12 = scalar_lea.hbm %s1115_s3, %s1104_s25  ;;  %s1118_s5 = int_to_ptr.vmem [resolvable:$true] %s137_s5 }
  0x24   : > { %p911_p1 = scmp.ne.s32.totalorder %s1115_s3, %s910_s12  ;;  %s914_s16 = scalar_lea.hbm %s1490_s0, 20480 }
  0x25   : > { %p915_p4 = scmp.lt.u32.totalorder %s1115_s3, %s1490_s0  ;;  %p916_p5 = scmp.lt.u32.totalorder %s914_s16, %s910_s12 }
  0x26   : > { %p912_p2 = pnand %p911_p1, %p826_p0  ;;  %p918_p7 = scmp.lt.u32.totalorder %s910_s12, %s1115_s3 }
  0x27   : > { %p917_p6 = por %p916_p5, %p915_p4 }
  0x28   : > { %p913_p3 = pneg %p912_p2 }
  0x29   : > { %p919_p10 = por %p918_p7, %p917_p6 }
  0x2b   : > { %p920_p13 = pnand %p919_p10, %p913_p3 }
  0x2d   : > { %923 = shalt.err (!%p920_p13)
}
  0x2e   : > { %s924_s23 = scalar_lea.vmem %s1118_s5, %s1104_s25  ;;  %s1022_s26 = smov [#allocation2]  }
  0x2f   : > { %p925_p1 = scmp.ne.s32.totalorder %s1118_s5, %s924_s23  ;;  %s928_s28 = sshll.u32 %s1022_s26, 4  ;;  %s929_s28 = int_to_ptr.vmem [resolvable:$false] %s928_s28 }
  0x30   : > { %s930_s29 = scalar_lea.vmem %s929_s28, 32768  ;;  %p931_p11 = scmp.lt.s32.totalorder %s1118_s5, %s929_s28 }
  0x31   : > { %p926_p2 = pnand %p925_p1, %p826_p0  ;;  %p932_p4 = scmp.lt.s32.totalorder %s930_s29, %s924_s23 }
  0x33   : > { %p927_p12 = pneg %p926_p2  ;;  %p933_p5 = por %p932_p4, %p931_p11 }
  0x35   : > { %p934_p6 = pnand %p933_p5, %p927_p12 }
  0x37   : > { %937 = shalt.err (!%p934_p6)
}
  0x38   : > { %s1023_s30 = smov 640   ;;  %s1024_s2 = smov 512  }
  0x39   : > { %143 = dma.hbm_to_vmem [thread:$0]  (%p826_p0), %s1115_s3, %s1104_s25, %s1118_s5, %s1107_s27, %s1023_s30, %s1024_s2, %s828_s4  }
  0x3a PF: > { %p831_p3 = scmp.ge.s32.totalorder %s1020_s11, 1  ;;  %p145_p7 = scmp.lt.s32.totalorder %s1020_s11, 3 }
  0x3c   : > { %p146_p11 = pnand %p831_p3, %p145_p7 }
  0x3d   : > { %s1150_s12 = sand.u32 (!%p146_p11), 1, %s1004_s7  }
  0x3e   : > { %149 = sbr.rel (%p146_p11) target bundleno = 481 (0x1e1), region = 24  ;;  %s832_s13 = sshll.u32 (!%p146_p11), %s1150_s12, 10 }
  0x3f   : > { %s152_s15 = scalar_lea.sflag (!%p146_p11), [#allocation3], %s1150_s12  ;;  %s1156_s24 = scalar_lea.vmem (!%p146_p11), [#allocation2], %s832_s13 }
  0x45   : > { %991 = dma.done.wait (%p1081_p8), %s152_s15, 16384  }
  0x46   : > { %993 = vsyncadd (%p1081_p8), %s152_s15, 4294950912  ;;  %v188_v0 = vld [vmem:[%s1156_s24 + $0x8] sm:$0xff]  ;;  %v187_v1 = vld [vmem:[%s1156_s24] sm:$0xff]  ;;  %s1230_s17 = scalar_lea.vmem [#allocation5], %s832_s13  ;;  %s700_s25 = scalar_lea.sflag [#allocation4], %s1150_s12 }
  0x47   : > { %347 = vxpose.xlu1.b32.start [1/16] %v188_v0, 128  ;;  %315 = vxpose.xlu0.b32.start [1/16] %v187_v1, 128  ;;  %v192_v2 = vld [vmem:[%s1156_s24 + $0x28] sm:$0xff]  ;;  %v191_v3 = vld [vmem:[%s1156_s24 + $0x20] sm:$0xff]  ;;  %v190_v32 = vld [vmem:[%s1156_s24 + $0x18] sm:$0xff]  ;;  %s835_s27 = sshll.u32 (%p1085_p9), %s1012_s9, 6 }
  0x48   : > { %v196_v4 = vld [vmem:[%s1156_s24 + $0x48] sm:$0xff]  ;;  %v195_v5 = vld [vmem:[%s1156_s24 + $0x40] sm:$0xff]  ;;  %v189_v33 = vld [vmem:[%s1156_s24 + $0x10] sm:$0xff]  ;;  %s709_s3 = ssub.s32 (%p1085_p9), 80, %s835_s27 }
  0x49   : > { %v200_v6 = vld [vmem:[%s1156_s24 + $0x68] sm:$0xff]  ;;  %v199_v7 = vld [vmem:[%s1156_s24 + $0x60] sm:$0xff]  ;;  %v194_v34 = vld [vmem:[%s1156_s24 + $0x38] sm:$0xff]  ;;  %p710_p8 = scmp.lt.s32.totalorder (%p1085_p9), %s709_s3, 64 }
  0x4a   : > { %v204_v8 = vld [vmem:[%s1156_s24 + $0x88] sm:$0xff]  ;;  %v203_v9 = vld [vmem:[%s1156_s24 + $0x80] sm:$0xff]  ;;  %v193_v35 = vld [vmem:[%s1156_s24 + $0x30] sm:$0xff] }
  0x4b   : > { %348 = vxpose.xlu1.b32.cont [2/16] %v192_v2, 128  ;;  %316 = vxpose.xlu0.b32.cont [2/16] %v191_v3, 128  ;;  %v208_v10 = vld [vmem:[%s1156_s24 + $0xa8] sm:$0xff]  ;;  %v207_v11 = vld [vmem:[%s1156_s24 + $0xa0] sm:$0xff]  ;;  %v198_v36 = vld [vmem:[%s1156_s24 + $0x58] sm:$0xff] }
  0x4c   : > { %v212_v12 = vld [vmem:[%s1156_s24 + $0xc8] sm:$0xff]  ;;  %v211_v13 = vld [vmem:[%s1156_s24 + $0xc0] sm:$0xff]  ;;  %v197_v37 = vld [vmem:[%s1156_s24 + $0x50] sm:$0xff] }
  0x4d   : > { %v216_v14 = vld [vmem:[%s1156_s24 + $0xe8] sm:$0xff]  ;;  %v215_v15 = vld [vmem:[%s1156_s24 + $0xe0] sm:$0xff]  ;;  %v202_v38 = vld [vmem:[%s1156_s24 + $0x78] sm:$0xff] }
  0x4e   : > { %v220_v16 = vld [vmem:[%s1156_s24 + $0x108] sm:$0xff]  ;;  %v219_v17 = vld [vmem:[%s1156_s24 + $0x100] sm:$0xff]  ;;  %v201_v39 = vld [vmem:[%s1156_s24 + $0x70] sm:$0xff] }
  0x4f   : > { %349 = vxpose.xlu1.b32.cont [3/16] %v196_v4, 128  ;;  %317 = vxpose.xlu0.b32.cont [3/16] %v195_v5, 128  ;;  %v224_v18 = vld [vmem:[%s1156_s24 + $0x128] sm:$0xff]  ;;  %v223_v19 = vld [vmem:[%s1156_s24 + $0x120] sm:$0xff]  ;;  %v206_v40 = vld [vmem:[%s1156_s24 + $0x98] sm:$0xff] }
  0x50   : > { %v228_v20 = vld [vmem:[%s1156_s24 + $0x148] sm:$0xff]  ;;  %v227_v21 = vld [vmem:[%s1156_s24 + $0x140] sm:$0xff]  ;;  %v205_v41 = vld [vmem:[%s1156_s24 + $0x90] sm:$0xff] }
  0x51   : > { %v232_v22 = vld [vmem:[%s1156_s24 + $0x168] sm:$0xff]  ;;  %v231_v23 = vld [vmem:[%s1156_s24 + $0x160] sm:$0xff]  ;;  %v210_v42 = vld [vmem:[%s1156_s24 + $0xb8] sm:$0xff] }
  0x52   : > { %v236_v24 = vld [vmem:[%s1156_s24 + $0x188] sm:$0xff]  ;;  %v235_v25 = vld [vmem:[%s1156_s24 + $0x180] sm:$0xff]  ;;  %v209_v43 = vld [vmem:[%s1156_s24 + $0xb0] sm:$0xff] }
  0x53   : > { %350 = vxpose.xlu1.b32.cont [4/16] %v200_v6, 128  ;;  %318 = vxpose.xlu0.b32.cont [4/16] %v199_v7, 128  ;;  %v240_v26 = vld [vmem:[%s1156_s24 + $0x1a8] sm:$0xff]  ;;  %v239_v27 = vld [vmem:[%s1156_s24 + $0x1a0] sm:$0xff]  ;;  %v214_v44 = vld [vmem:[%s1156_s24 + $0xd8] sm:$0xff] }
  0x54   : > { %v244_v28 = vld [vmem:[%s1156_s24 + $0x1c8] sm:$0xff]  ;;  %v243_v29 = vld [vmem:[%s1156_s24 + $0x1c0] sm:$0xff]  ;;  %v213_v45 = vld [vmem:[%s1156_s24 + $0xd0] sm:$0xff] }
  0x55   : > { %v248_v30 = vld [vmem:[%s1156_s24 + $0x1e8] sm:$0xff]  ;;  %v247_v31 = vld [vmem:[%s1156_s24 + $0x1e0] sm:$0xff]  ;;  %v218_v46 = vld [vmem:[%s1156_s24 + $0xf8] sm:$0xff] }
  0x56   : > { %v217_v47 = vld [vmem:[%s1156_s24 + $0xf0] sm:$0xff]  ;;  %v222_v48 = vld [vmem:[%s1156_s24 + $0x118] sm:$0xff]  ;;  %v252_v0 = vld [vmem:[%s1156_s24 + $0x208] sm:$0xff] }
  0x57   : > { %351 = vxpose.xlu1.b32.cont [5/16] %v204_v8, 128  ;;  %319 = vxpose.xlu0.b32.cont [5/16] %v203_v9, 128  ;;  %v221_v49 = vld [vmem:[%s1156_s24 + $0x110] sm:$0xff]  ;;  %v226_v50 = vld [vmem:[%s1156_s24 + $0x138] sm:$0xff]  ;;  %v251_v1 = vld [vmem:[%s1156_s24 + $0x200] sm:$0xff] }
  0x58   : > { %v225_v51 = vld [vmem:[%s1156_s24 + $0x130] sm:$0xff]  ;;  %v230_v52 = vld [vmem:[%s1156_s24 + $0x158] sm:$0xff]  ;;  %v256_v4 = vld [vmem:[%s1156_s24 + $0x228] sm:$0xff] }
  0x59   : > { %v229_v53 = vld [vmem:[%s1156_s24 + $0x150] sm:$0xff]  ;;  %v234_v54 = vld [vmem:[%s1156_s24 + $0x178] sm:$0xff]  ;;  %v255_v5 = vld [vmem:[%s1156_s24 + $0x220] sm:$0xff] }
  0x5a   : > { %v233_v55 = vld [vmem:[%s1156_s24 + $0x170] sm:$0xff]  ;;  %v238_v56 = vld [vmem:[%s1156_s24 + $0x198] sm:$0xff]  ;;  %v260_v8 = vld [vmem:[%s1156_s24 + $0x248] sm:$0xff] }
  0x5b   : > { %352 = vxpose.xlu1.b32.cont [6/16] %v208_v10, 128  ;;  %320 = vxpose.xlu0.b32.cont [6/16] %v207_v11, 128  ;;  %v237_v57 = vld [vmem:[%s1156_s24 + $0x190] sm:$0xff]  ;;  %v242_v58 = vld [vmem:[%s1156_s24 + $0x1b8] sm:$0xff]  ;;  %v259_v9 = vld [vmem:[%s1156_s24 + $0x240] sm:$0xff] }
  0x5c   : > { %v241_v59 = vld [vmem:[%s1156_s24 + $0x1b0] sm:$0xff]  ;;  %v246_v60 = vld [vmem:[%s1156_s24 + $0x1d8] sm:$0xff] }
  0x5d   : > { %v245_v61 = vld [vmem:[%s1156_s24 + $0x1d0] sm:$0xff]  ;;  %v250_v62 = vld [vmem:[%s1156_s24 + $0x1f8] sm:$0xff] }
  0x5e   : > { %v249_v63 = vld [vmem:[%s1156_s24 + $0x1f0] sm:$0xff] }
  0x5f   : > { %353 = vxpose.xlu1.b32.cont [7/16] %v212_v12, 128  ;;  %321 = vxpose.xlu0.b32.cont [7/16] %v211_v13, 128  ;;  %v264_v12 = vld [vmem:[%s1156_s24 + $0x268] sm:$0xff]  ;;  %v263_v13 = vld [vmem:[%s1156_s24 + $0x260] sm:$0xff] }
  0x63   : > { %354 = vxpose.xlu1.b32.cont [8/16] %v216_v14, 128  ;;  %322 = vxpose.xlu0.b32.cont [8/16] %v215_v15, 128 }
  0x67   : > { %355 = vxpose.xlu1.b32.cont [9/16] %v220_v16, 128  ;;  %323 = vxpose.xlu0.b32.cont [9/16] %v219_v17, 128  ;;  %v268_v16 = vld [vmem:[%s1156_s24 + $0x288] sm:$0xff]  ;;  %v267_v17 = vld [vmem:[%s1156_s24 + $0x280] sm:$0xff] }
  0x6b   : > { %356 = vxpose.xlu1.b32.cont [10/16] %v224_v18, 128  ;;  %324 = vxpose.xlu0.b32.cont [10/16] %v223_v19, 128 }
  0x6f   : > { %357 = vxpose.xlu1.b32.cont [11/16] %v228_v20, 128  ;;  %325 = vxpose.xlu0.b32.cont [11/16] %v227_v21, 128  ;;  %v272_v20 = vld [vmem:[%s1156_s24 + $0x2a8] sm:$0xff]  ;;  %v271_v21 = vld [vmem:[%s1156_s24 + $0x2a0] sm:$0xff] }
  0x73   : > { %358 = vxpose.xlu1.b32.cont [12/16] %v232_v22, 128  ;;  %326 = vxpose.xlu0.b32.cont [12/16] %v231_v23, 128 }
  0x77   : > { %359 = vxpose.xlu1.b32.cont [13/16] %v236_v24, 128  ;;  %327 = vxpose.xlu0.b32.cont [13/16] %v235_v25, 128  ;;  %v276_v24 = vld [vmem:[%s1156_s24 + $0x2c8] sm:$0xff]  ;;  %v275_v25 = vld [vmem:[%s1156_s24 + $0x2c0] sm:$0xff] }
  0x7b   : > { %360 = vxpose.xlu1.b32.cont [14/16] %v240_v26, 128  ;;  %328 = vxpose.xlu0.b32.cont [14/16] %v239_v27, 128 }
  0x7f   : > { %361 = vxpose.xlu1.b32.cont [15/16] %v244_v28, 128  ;;  %329 = vxpose.xlu0.b32.cont [15/16] %v243_v29, 128  ;;  %v280_v28 = vld [vmem:[%s1156_s24 + $0x2e8] sm:$0xff]  ;;  %v279_v29 = vld [vmem:[%s1156_s24 + $0x2e0] sm:$0xff] }
  0x83   : > { %362 = vxpose.xlu1.b32.end [16/16] %v248_v30, 128  ;;  %330 = vxpose.xlu0.b32.end [16/16] %v247_v31, 128 }
  0x87   : > { %411 = vxpose.xlu1.b32.start [1/16] %v190_v32, 128  ;;  %379 = vxpose.xlu0.b32.start [1/16] %v189_v33, 128  ;;  %v284_v32 = vld [vmem:[%s1156_s24 + $0x308] sm:$0xff]  ;;  %v283_v33 = vld [vmem:[%s1156_s24 + $0x300] sm:$0xff] }
  0x8b   : > { %412 = vxpose.xlu1.b32.cont [2/16] %v194_v34, 128  ;;  %380 = vxpose.xlu0.b32.cont [2/16] %v193_v35, 128 }
  0x8f   : > { %413 = vxpose.xlu1.b32.cont [3/16] %v198_v36, 128  ;;  %381 = vxpose.xlu0.b32.cont [3/16] %v197_v37, 128  ;;  %v288_v36 = vld [vmem:[%s1156_s24 + $0x328] sm:$0xff]  ;;  %v287_v37 = vld [vmem:[%s1156_s24 + $0x320] sm:$0xff] }
  0x93   : > { %414 = vxpose.xlu1.b32.cont [4/16] %v202_v38, 128  ;;  %382 = vxpose.xlu0.b32.cont [4/16] %v201_v39, 128 }
  0x97   : > { %415 = vxpose.xlu1.b32.cont [5/16] %v206_v40, 128  ;;  %383 = vxpose.xlu0.b32.cont [5/16] %v205_v41, 128  ;;  %v292_v40 = vld [vmem:[%s1156_s24 + $0x348] sm:$0xff]  ;;  %v291_v41 = vld [vmem:[%s1156_s24 + $0x340] sm:$0xff] }
  0x9b   : > { %416 = vxpose.xlu1.b32.cont [6/16] %v210_v42, 128  ;;  %384 = vxpose.xlu0.b32.cont [6/16] %v209_v43, 128 }
  0x9f   : > { %417 = vxpose.xlu1.b32.cont [7/16] %v214_v44, 128  ;;  %385 = vxpose.xlu0.b32.cont [7/16] %v213_v45, 128  ;;  %v296_v44 = vld [vmem:[%s1156_s24 + $0x368] sm:$0xff]  ;;  %v295_v45 = vld [vmem:[%s1156_s24 + $0x360] sm:$0xff] }
  0xa3   : > { %418 = vxpose.xlu1.b32.cont [8/16] %v218_v46, 128  ;;  %386 = vxpose.xlu0.b32.cont [8/16] %v217_v47, 128 }
  0xa7   : > { %419 = vxpose.xlu1.b32.cont [9/16] %v222_v48, 128  ;;  %387 = vxpose.xlu0.b32.cont [9/16] %v221_v49, 128  ;;  %v300_v48 = vld [vmem:[%s1156_s24 + $0x388] sm:$0xff]  ;;  %v299_v49 = vld [vmem:[%s1156_s24 + $0x380] sm:$0xff] }
  0xab   : > { %420 = vxpose.xlu1.b32.cont [10/16] %v226_v50, 128  ;;  %388 = vxpose.xlu0.b32.cont [10/16] %v225_v51, 128 }
  0xaf   : > { %421 = vxpose.xlu1.b32.cont [11/16] %v230_v52, 128  ;;  %389 = vxpose.xlu0.b32.cont [11/16] %v229_v53, 128  ;;  %v304_v52 = vld [vmem:[%s1156_s24 + $0x3a8] sm:$0xff]  ;;  %v303_v53 = vld [vmem:[%s1156_s24 + $0x3a0] sm:$0xff] }
  0xb3   : > { %422 = vxpose.xlu1.b32.cont [12/16] %v234_v54, 128  ;;  %390 = vxpose.xlu0.b32.cont [12/16] %v233_v55, 128 }
  0xb7   : > { %423 = vxpose.xlu1.b32.cont [13/16] %v238_v56, 128  ;;  %391 = vxpose.xlu0.b32.cont [13/16] %v237_v57, 128  ;;  %v308_v56 = vld [vmem:[%s1156_s24 + $0x3c8] sm:$0xff]  ;;  %v307_v57 = vld [vmem:[%s1156_s24 + $0x3c0] sm:$0xff] }
  0xbb   : > { %424 = vxpose.xlu1.b32.cont [14/16] %v242_v58, 128  ;;  %392 = vxpose.xlu0.b32.cont [14/16] %v241_v59, 128 }
  0xbf   : > { %425 = vxpose.xlu1.b32.cont [15/16] %v246_v60, 128  ;;  %393 = vxpose.xlu0.b32.cont [15/16] %v245_v61, 128  ;;  %v312_v60 = vld [vmem:[%s1156_s24 + $0x3e8] sm:$0xff]  ;;  %v311_v61 = vld [vmem:[%s1156_s24 + $0x3e0] sm:$0xff] }
  0xc3   : > { %426 = vxpose.xlu1.b32.end [16/16] %v250_v62, 128  ;;  %394 = vxpose.xlu0.b32.end [16/16] %v249_v63, 128 }
  0xc7   : > { %475 = vxpose.xlu1.b32.start [1/16] %v252_v0, 128  ;;  %v363_v2 = vpop.trf.xlu1  ;;  %443 = vxpose.xlu0.b32.start [1/16] %v251_v1, 128  ;;  %v331_v3 = vpop.trf.xlu0  ;;  %v254_v0 = vld [vmem:[%s1156_s24 + $0x218] sm:$0xff]  ;;  %v253_v1 = vld [vmem:[%s1156_s24 + $0x210] sm:$0xff] }
  0xc8   : > { %603 = vst [vmem:[%s1230_s17 + $0x100] sm:$0xff] %v363_v2  ;;  %571 = vst [vmem:[%s1230_s17] sm:$0xff] %v331_v3 }
  0xcb   : > { %476 = vxpose.xlu1.b32.cont [2/16] %v256_v4, 128  ;;  %v364_v6 = vpop.trf.xlu1  ;;  %444 = vxpose.xlu0.b32.cont [2/16] %v255_v5, 128  ;;  %v332_v7 = vpop.trf.xlu0  ;;  %v258_v4 = vld [vmem:[%s1156_s24 + $0x238] sm:$0xff]  ;;  %v257_v5 = vld [vmem:[%s1156_s24 + $0x230] sm:$0xff] }
  0xcc   : > { %605 = vst [vmem:[%s1230_s17 + $0x110] sm:$0xff] %v364_v6  ;;  %573 = vst [vmem:[%s1230_s17 + $0x10] sm:$0xff] %v332_v7 }
  0xcf   : > { %477 = vxpose.xlu1.b32.cont [3/16] %v260_v8, 128  ;;  %v365_v10 = vpop.trf.xlu1  ;;  %445 = vxpose.xlu0.b32.cont [3/16] %v259_v9, 128  ;;  %v333_v11 = vpop.trf.xlu0  ;;  %v262_v8 = vld [vmem:[%s1156_s24 + $0x258] sm:$0xff]  ;;  %v261_v9 = vld [vmem:[%s1156_s24 + $0x250] sm:$0xff] }
  0xd0   : > { %607 = vst [vmem:[%s1230_s17 + $0x120] sm:$0xff] %v365_v10  ;;  %575 = vst [vmem:[%s1230_s17 + $0x20] sm:$0xff] %v333_v11 }
  0xd3   : > { %478 = vxpose.xlu1.b32.cont [4/16] %v264_v12, 128  ;;  %v366_v14 = vpop.trf.xlu1  ;;  %446 = vxpose.xlu0.b32.cont [4/16] %v263_v13, 128  ;;  %v334_v15 = vpop.trf.xlu0  ;;  %v266_v12 = vld [vmem:[%s1156_s24 + $0x278] sm:$0xff]  ;;  %v265_v13 = vld [vmem:[%s1156_s24 + $0x270] sm:$0xff] }
  0xd4   : > { %609 = vst [vmem:[%s1230_s17 + $0x130] sm:$0xff] %v366_v14  ;;  %577 = vst [vmem:[%s1230_s17 + $0x30] sm:$0xff] %v334_v15 }
  0xd7   : > { %479 = vxpose.xlu1.b32.cont [5/16] %v268_v16, 128  ;;  %v367_v18 = vpop.trf.xlu1  ;;  %447 = vxpose.xlu0.b32.cont [5/16] %v267_v17, 128  ;;  %v335_v19 = vpop.trf.xlu0  ;;  %v270_v16 = vld [vmem:[%s1156_s24 + $0x298] sm:$0xff]  ;;  %v269_v17 = vld [vmem:[%s1156_s24 + $0x290] sm:$0xff] }
  0xd8   : > { %611 = vst [vmem:[%s1230_s17 + $0x140] sm:$0xff] %v367_v18  ;;  %579 = vst [vmem:[%s1230_s17 + $0x40] sm:$0xff] %v335_v19 }
  0xdb   : > { %480 = vxpose.xlu1.b32.cont [6/16] %v272_v20, 128  ;;  %v368_v22 = vpop.trf.xlu1  ;;  %448 = vxpose.xlu0.b32.cont [6/16] %v271_v21, 128  ;;  %v336_v23 = vpop.trf.xlu0  ;;  %v274_v20 = vld [vmem:[%s1156_s24 + $0x2b8] sm:$0xff]  ;;  %v273_v21 = vld [vmem:[%s1156_s24 + $0x2b0] sm:$0xff] }
  0xdc   : > { %613 = vst [vmem:[%s1230_s17 + $0x150] sm:$0xff] %v368_v22  ;;  %581 = vst [vmem:[%s1230_s17 + $0x50] sm:$0xff] %v336_v23 }
  0xdf   : > { %481 = vxpose.xlu1.b32.cont [7/16] %v276_v24, 128  ;;  %v369_v26 = vpop.trf.xlu1  ;;  %449 = vxpose.xlu0.b32.cont [7/16] %v275_v25, 128  ;;  %v337_v27 = vpop.trf.xlu0  ;;  %v278_v24 = vld [vmem:[%s1156_s24 + $0x2d8] sm:$0xff]  ;;  %v277_v25 = vld [vmem:[%s1156_s24 + $0x2d0] sm:$0xff] }
  0xe0   : > { %615 = vst [vmem:[%s1230_s17 + $0x160] sm:$0xff] %v369_v26  ;;  %583 = vst [vmem:[%s1230_s17 + $0x60] sm:$0xff] %v337_v27 }
  0xe3   : > { %482 = vxpose.xlu1.b32.cont [8/16] %v280_v28, 128  ;;  %v370_v30 = vpop.trf.xlu1  ;;  %450 = vxpose.xlu0.b32.cont [8/16] %v279_v29, 128  ;;  %v338_v31 = vpop.trf.xlu0  ;;  %v282_v28 = vld [vmem:[%s1156_s24 + $0x2f8] sm:$0xff]  ;;  %v281_v29 = vld [vmem:[%s1156_s24 + $0x2f0] sm:$0xff] }
  0xe4   : > { %617 = vst [vmem:[%s1230_s17 + $0x170] sm:$0xff] %v370_v30  ;;  %585 = vst [vmem:[%s1230_s17 + $0x70] sm:$0xff] %v338_v31 }
  0xe7   : > { %483 = vxpose.xlu1.b32.cont [9/16] %v284_v32, 128  ;;  %v371_v34 = vpop.trf.xlu1  ;;  %451 = vxpose.xlu0.b32.cont [9/16] %v283_v33, 128  ;;  %v339_v35 = vpop.trf.xlu0  ;;  %v286_v32 = vld [vmem:[%s1156_s24 + $0x318] sm:$0xff]  ;;  %v285_v33 = vld [vmem:[%s1156_s24 + $0x310] sm:$0xff] }
  0xe8   : > { %619 = vst [vmem:[%s1230_s17 + $0x180] sm:$0xff] %v371_v34  ;;  %587 = vst [vmem:[%s1230_s17 + $0x80] sm:$0xff] %v339_v35 }
  0xeb   : > { %484 = vxpose.xlu1.b32.cont [10/16] %v288_v36, 128  ;;  %v372_v38 = vpop.trf.xlu1  ;;  %452 = vxpose.xlu0.b32.cont [10/16] %v287_v37, 128  ;;  %v340_v39 = vpop.trf.xlu0  ;;  %v290_v36 = vld [vmem:[%s1156_s24 + $0x338] sm:$0xff]  ;;  %v289_v37 = vld [vmem:[%s1156_s24 + $0x330] sm:$0xff] }
  0xec   : > { %621 = vst [vmem:[%s1230_s17 + $0x190] sm:$0xff] %v372_v38  ;;  %589 = vst [vmem:[%s1230_s17 + $0x90] sm:$0xff] %v340_v39 }
  0xef   : > { %485 = vxpose.xlu1.b32.cont [11/16] %v292_v40, 128  ;;  %v373_v42 = vpop.trf.xlu1  ;;  %453 = vxpose.xlu0.b32.cont [11/16] %v291_v41, 128  ;;  %v341_v43 = vpop.trf.xlu0  ;;  %v294_v40 = vld [vmem:[%s1156_s24 + $0x358] sm:$0xff]  ;;  %v293_v41 = vld [vmem:[%s1156_s24 + $0x350] sm:$0xff] }
  0xf0   : > { %623 = vst [vmem:[%s1230_s17 + $0x1a0] sm:$0xff] %v373_v42  ;;  %591 = vst [vmem:[%s1230_s17 + $0xa0] sm:$0xff] %v341_v43 }
  0xf3   : > { %486 = vxpose.xlu1.b32.cont [12/16] %v296_v44, 128  ;;  %v374_v46 = vpop.trf.xlu1  ;;  %454 = vxpose.xlu0.b32.cont [12/16] %v295_v45, 128  ;;  %v342_v47 = vpop.trf.xlu0  ;;  %v298_v44 = vld [vmem:[%s1156_s24 + $0x378] sm:$0xff]  ;;  %v297_v45 = vld [vmem:[%s1156_s24 + $0x370] sm:$0xff] }
  0xf4   : > { %625 = vst [vmem:[%s1230_s17 + $0x1b0] sm:$0xff] %v374_v46  ;;  %593 = vst [vmem:[%s1230_s17 + $0xb0] sm:$0xff] %v342_v47 }
  0xf7   : > { %487 = vxpose.xlu1.b32.cont [13/16] %v300_v48, 128  ;;  %v375_v50 = vpop.trf.xlu1  ;;  %455 = vxpose.xlu0.b32.cont [13/16] %v299_v49, 128  ;;  %v343_v51 = vpop.trf.xlu0  ;;  %v302_v48 = vld [vmem:[%s1156_s24 + $0x398] sm:$0xff]  ;;  %v301_v49 = vld [vmem:[%s1156_s24 + $0x390] sm:$0xff] }
  0xf8   : > { %627 = vst [vmem:[%s1230_s17 + $0x1c0] sm:$0xff] %v375_v50  ;;  %595 = vst [vmem:[%s1230_s17 + $0xc0] sm:$0xff] %v343_v51 }
  0xfb   : > { %488 = vxpose.xlu1.b32.cont [14/16] %v304_v52, 128  ;;  %v376_v54 = vpop.trf.xlu1  ;;  %456 = vxpose.xlu0.b32.cont [14/16] %v303_v53, 128  ;;  %v344_v55 = vpop.trf.xlu0  ;;  %v306_v52 = vld [vmem:[%s1156_s24 + $0x3b8] sm:$0xff]  ;;  %v305_v53 = vld [vmem:[%s1156_s24 + $0x3b0] sm:$0xff] }
  0xfc   : > { %629 = vst [vmem:[%s1230_s17 + $0x1d0] sm:$0xff] %v376_v54  ;;  %597 = vst [vmem:[%s1230_s17 + $0xd0] sm:$0xff] %v344_v55 }
  0xff   : > { %489 = vxpose.xlu1.b32.cont [15/16] %v308_v56, 128  ;;  %v377_v58 = vpop.trf.xlu1  ;;  %457 = vxpose.xlu0.b32.cont [15/16] %v307_v57, 128  ;;  %v345_v59 = vpop.trf.xlu0  ;;  %v310_v56 = vld [vmem:[%s1156_s24 + $0x3d8] sm:$0xff]  ;;  %v309_v57 = vld [vmem:[%s1156_s24 + $0x3d0] sm:$0xff] }
 0x100   : > { %631 = vst [vmem:[%s1230_s17 + $0x1e0] sm:$0xff] %v377_v58  ;;  %599 = vst [vmem:[%s1230_s17 + $0xe0] sm:$0xff] %v345_v59 }
 0x103   : > { %490 = vxpose.xlu1.b32.end [16/16] %v312_v60, 128  ;;  %v378_v62 = vpop.trf.xlu1  ;;  %458 = vxpose.xlu0.b32.end [16/16] %v311_v61, 128  ;;  %v346_v63 = vpop.trf.xlu0  ;;  %v314_v60 = vld [vmem:[%s1156_s24 + $0x3f8] sm:$0xff]  ;;  %v313_v61 = vld [vmem:[%s1156_s24 + $0x3f0] sm:$0xff] }
 0x104   : > { %633 = vst [vmem:[%s1230_s17 + $0x1f0] sm:$0xff] %v378_v62  ;;  %601 = vst [vmem:[%s1230_s17 + $0xf0] sm:$0xff] %v346_v63 }
 0x107   : > { %539 = vxpose.xlu1.b32.start [1/16] %v254_v0, 128  ;;  %v427_v2 = vpop.trf.xlu1  ;;  %507 = vxpose.xlu0.b32.start [1/16] %v253_v1, 128  ;;  %v395_v3 = vpop.trf.xlu0 }
 0x108   : > { %667 = vst [vmem:[%s1230_s17 + $0x300] sm:$0xff] %v427_v2  ;;  %635 = vst [vmem:[%s1230_s17 + $0x200] sm:$0xff] %v395_v3 }
 0x10b   : > { %540 = vxpose.xlu1.b32.cont [2/16] %v258_v4, 128  ;;  %v428_v6 = vpop.trf.xlu1  ;;  %508 = vxpose.xlu0.b32.cont [2/16] %v257_v5, 128  ;;  %v396_v7 = vpop.trf.xlu0 }
 0x10c   : > { %669 = vst [vmem:[%s1230_s17 + $0x310] sm:$0xff] %v428_v6  ;;  %637 = vst [vmem:[%s1230_s17 + $0x210] sm:$0xff] %v396_v7 }
 0x10f   : > { %541 = vxpose.xlu1.b32.cont [3/16] %v262_v8, 128  ;;  %v429_v10 = vpop.trf.xlu1  ;;  %509 = vxpose.xlu0.b32.cont [3/16] %v261_v9, 128  ;;  %v397_v11 = vpop.trf.xlu0 }
 0x110   : > { %671 = vst [vmem:[%s1230_s17 + $0x320] sm:$0xff] %v429_v10  ;;  %639 = vst [vmem:[%s1230_s17 + $0x220] sm:$0xff] %v397_v11 }
 0x113   : > { %542 = vxpose.xlu1.b32.cont [4/16] %v266_v12, 128  ;;  %v430_v14 = vpop.trf.xlu1  ;;  %510 = vxpose.xlu0.b32.cont [4/16] %v265_v13, 128  ;;  %v398_v15 = vpop.trf.xlu0 }
 0x114   : > { %673 = vst [vmem:[%s1230_s17 + $0x330] sm:$0xff] %v430_v14  ;;  %641 = vst [vmem:[%s1230_s17 + $0x230] sm:$0xff] %v398_v15 }
 0x117   : > { %543 = vxpose.xlu1.b32.cont [5/16] %v270_v16, 128  ;;  %v431_v18 = vpop.trf.xlu1  ;;  %511 = vxpose.xlu0.b32.cont [5/16] %v269_v17, 128  ;;  %v399_v19 = vpop.trf.xlu0 }
 0x118   : > { %675 = vst [vmem:[%s1230_s17 + $0x340] sm:$0xff] %v431_v18  ;;  %643 = vst [vmem:[%s1230_s17 + $0x240] sm:$0xff] %v399_v19 }
 0x11b   : > { %544 = vxpose.xlu1.b32.cont [6/16] %v274_v20, 128  ;;  %v432_v22 = vpop.trf.xlu1  ;;  %512 = vxpose.xlu0.b32.cont [6/16] %v273_v21, 128  ;;  %v400_v23 = vpop.trf.xlu0 }
 0x11c   : > { %677 = vst [vmem:[%s1230_s17 + $0x350] sm:$0xff] %v432_v22  ;;  %645 = vst [vmem:[%s1230_s17 + $0x250] sm:$0xff] %v400_v23 }
 0x11f   : > { %545 = vxpose.xlu1.b32.cont [7/16] %v278_v24, 128  ;;  %v433_v26 = vpop.trf.xlu1  ;;  %513 = vxpose.xlu0.b32.cont [7/16] %v277_v25, 128  ;;  %v401_v27 = vpop.trf.xlu0 }
 0x120   : > { %679 = vst [vmem:[%s1230_s17 + $0x360] sm:$0xff] %v433_v26  ;;  %647 = vst [vmem:[%s1230_s17 + $0x260] sm:$0xff] %v401_v27 }
 0x123   : > { %546 = vxpose.xlu1.b32.cont [8/16] %v282_v28, 128  ;;  %v434_v30 = vpop.trf.xlu1  ;;  %514 = vxpose.xlu0.b32.cont [8/16] %v281_v29, 128  ;;  %v402_v31 = vpop.trf.xlu0 }
 0x124   : > { %681 = vst [vmem:[%s1230_s17 + $0x370] sm:$0xff] %v434_v30  ;;  %649 = vst [vmem:[%s1230_s17 + $0x270] sm:$0xff] %v402_v31 }
 0x127   : > { %547 = vxpose.xlu1.b32.cont [9/16] %v286_v32, 128  ;;  %v435_v34 = vpop.trf.xlu1  ;;  %515 = vxpose.xlu0.b32.cont [9/16] %v285_v33, 128  ;;  %v403_v35 = vpop.trf.xlu0 }
 0x128   : > { %683 = vst [vmem:[%s1230_s17 + $0x380] sm:$0xff] %v435_v34  ;;  %651 = vst [vmem:[%s1230_s17 + $0x280] sm:$0xff] %v403_v35 }
 0x12b   : > { %548 = vxpose.xlu1.b32.cont [10/16] %v290_v36, 128  ;;  %v436_v38 = vpop.trf.xlu1  ;;  %516 = vxpose.xlu0.b32.cont [10/16] %v289_v37, 128  ;;  %v404_v39 = vpop.trf.xlu0 }
 0x12c   : > { %685 = vst [vmem:[%s1230_s17 + $0x390] sm:$0xff] %v436_v38  ;;  %653 = vst [vmem:[%s1230_s17 + $0x290] sm:$0xff] %v404_v39 }
 0x12f   : > { %549 = vxpose.xlu1.b32.cont [11/16] %v294_v40, 128  ;;  %v437_v42 = vpop.trf.xlu1  ;;  %517 = vxpose.xlu0.b32.cont [11/16] %v293_v41, 128  ;;  %v405_v43 = vpop.trf.xlu0 }
 0x130   : > { %687 = vst [vmem:[%s1230_s17 + $0x3a0] sm:$0xff] %v437_v42  ;;  %655 = vst [vmem:[%s1230_s17 + $0x2a0] sm:$0xff] %v405_v43 }
 0x133   : > { %550 = vxpose.xlu1.b32.cont [12/16] %v298_v44, 128  ;;  %v438_v46 = vpop.trf.xlu1  ;;  %518 = vxpose.xlu0.b32.cont [12/16] %v297_v45, 128  ;;  %v406_v47 = vpop.trf.xlu0 }
 0x134   : > { %689 = vst [vmem:[%s1230_s17 + $0x3b0] sm:$0xff] %v438_v46  ;;  %657 = vst [vmem:[%s1230_s17 + $0x2b0] sm:$0xff] %v406_v47 }
 0x137   : > { %551 = vxpose.xlu1.b32.cont [13/16] %v302_v48, 128  ;;  %v439_v50 = vpop.trf.xlu1  ;;  %519 = vxpose.xlu0.b32.cont [13/16] %v301_v49, 128  ;;  %v407_v51 = vpop.trf.xlu0 }
 0x138   : > { %691 = vst [vmem:[%s1230_s17 + $0x3c0] sm:$0xff] %v439_v50  ;;  %659 = vst [vmem:[%s1230_s17 + $0x2c0] sm:$0xff] %v407_v51 }
 0x13b   : > { %552 = vxpose.xlu1.b32.cont [14/16] %v306_v52, 128  ;;  %v440_v54 = vpop.trf.xlu1  ;;  %520 = vxpose.xlu0.b32.cont [14/16] %v305_v53, 128  ;;  %v408_v55 = vpop.trf.xlu0 }
 0x13c   : > { %693 = vst [vmem:[%s1230_s17 + $0x3d0] sm:$0xff] %v440_v54  ;;  %661 = vst [vmem:[%s1230_s17 + $0x2d0] sm:$0xff] %v408_v55 }
 0x13f   : > { %553 = vxpose.xlu1.b32.cont [15/16] %v310_v56, 128  ;;  %v441_v58 = vpop.trf.xlu1  ;;  %521 = vxpose.xlu0.b32.cont [15/16] %v309_v57, 128  ;;  %v409_v59 = vpop.trf.xlu0 }
 0x140   : > { %695 = vst [vmem:[%s1230_s17 + $0x3e0] sm:$0xff] %v441_v58  ;;  %663 = vst [vmem:[%s1230_s17 + $0x2e0] sm:$0xff] %v409_v59 }
 0x143   : > { %554 = vxpose.xlu1.b32.end [16/16] %v314_v60, 128  ;;  %v442_v62 = vpop.trf.xlu1  ;;  %522 = vxpose.xlu0.b32.end [16/16] %v313_v61, 128  ;;  %v410_v63 = vpop.trf.xlu0 }
 0x144   : > { %697 = vst [vmem:[%s1230_s17 + $0x3f0] sm:$0xff] %v442_v62  ;;  %665 = vst [vmem:[%s1230_s17 + $0x2f0] sm:$0xff] %v410_v63 }
 0x147   : > { %v491_v0 = vpop.trf.xlu1  ;;  %v459_v1 = vpop.trf.xlu0 }
 0x148   : > { %604 = vst [vmem:[%s1230_s17 + $0x108] sm:$0xff] %v491_v0  ;;  %572 = vst [vmem:[%s1230_s17 + $0x8] sm:$0xff] %v459_v1 }
 0x14b   : > { %v492_v2 = vpop.trf.xlu1  ;;  %v460_v3 = vpop.trf.xlu0 }
 0x14c   : > { %606 = vst [vmem:[%s1230_s17 + $0x118] sm:$0xff] %v492_v2  ;;  %574 = vst [vmem:[%s1230_s17 + $0x18] sm:$0xff] %v460_v3 }
 0x14f   : > { %v493_v4 = vpop.trf.xlu1  ;;  %v461_v5 = vpop.trf.xlu0 }
 0x150   : > { %608 = vst [vmem:[%s1230_s17 + $0x128] sm:$0xff] %v493_v4  ;;  %576 = vst [vmem:[%s1230_s17 + $0x28] sm:$0xff] %v461_v5 }
 0x153   : > { %v494_v6 = vpop.trf.xlu1  ;;  %v462_v7 = vpop.trf.xlu0 }
 0x154   : > { %610 = vst [vmem:[%s1230_s17 + $0x138] sm:$0xff] %v494_v6  ;;  %578 = vst [vmem:[%s1230_s17 + $0x38] sm:$0xff] %v462_v7 }
 0x157   : > { %v495_v8 = vpop.trf.xlu1  ;;  %v463_v9 = vpop.trf.xlu0 }
 0x158   : > { %612 = vst [vmem:[%s1230_s17 + $0x148] sm:$0xff] %v495_v8  ;;  %580 = vst [vmem:[%s1230_s17 + $0x48] sm:$0xff] %v463_v9 }
 0x15b   : > { %v496_v10 = vpop.trf.xlu1  ;;  %v464_v11 = vpop.trf.xlu0 }
 0x15c   : > { %614 = vst [vmem:[%s1230_s17 + $0x158] sm:$0xff] %v496_v10  ;;  %582 = vst [vmem:[%s1230_s17 + $0x58] sm:$0xff] %v464_v11 }
 0x15f   : > { %v497_v12 = vpop.trf.xlu1  ;;  %v465_v13 = vpop.trf.xlu0 }
 0x160   : > { %616 = vst [vmem:[%s1230_s17 + $0x168] sm:$0xff] %v497_v12  ;;  %584 = vst [vmem:[%s1230_s17 + $0x68] sm:$0xff] %v465_v13 }
 0x163   : > { %v498_v14 = vpop.trf.xlu1  ;;  %v466_v15 = vpop.trf.xlu0 }
 0x164   : > { %618 = vst [vmem:[%s1230_s17 + $0x178] sm:$0xff] %v498_v14  ;;  %586 = vst [vmem:[%s1230_s17 + $0x78] sm:$0xff] %v466_v15 }
 0x167   : > { %v499_v16 = vpop.trf.xlu1  ;;  %v467_v17 = vpop.trf.xlu0 }
 0x168   : > { %620 = vst [vmem:[%s1230_s17 + $0x188] sm:$0xff] %v499_v16  ;;  %588 = vst [vmem:[%s1230_s17 + $0x88] sm:$0xff] %v467_v17 }
 0x16b   : > { %v500_v18 = vpop.trf.xlu1  ;;  %v468_v19 = vpop.trf.xlu0 }
 0x16c   : > { %622 = vst [vmem:[%s1230_s17 + $0x198] sm:$0xff] %v500_v18  ;;  %590 = vst [vmem:[%s1230_s17 + $0x98] sm:$0xff] %v468_v19 }
 0x16f   : > { %v501_v20 = vpop.trf.xlu1  ;;  %v469_v21 = vpop.trf.xlu0 }
 0x170   : > { %624 = vst [vmem:[%s1230_s17 + $0x1a8] sm:$0xff] %v501_v20  ;;  %592 = vst [vmem:[%s1230_s17 + $0xa8] sm:$0xff] %v469_v21 }
 0x173   : > { %v502_v22 = vpop.trf.xlu1  ;;  %v470_v23 = vpop.trf.xlu0 }
 0x174   : > { %626 = vst [vmem:[%s1230_s17 + $0x1b8] sm:$0xff] %v502_v22  ;;  %594 = vst [vmem:[%s1230_s17 + $0xb8] sm:$0xff] %v470_v23 }
 0x177   : > { %v503_v24 = vpop.trf.xlu1  ;;  %v471_v25 = vpop.trf.xlu0 }
 0x178   : > { %628 = vst [vmem:[%s1230_s17 + $0x1c8] sm:$0xff] %v503_v24  ;;  %596 = vst [vmem:[%s1230_s17 + $0xc8] sm:$0xff] %v471_v25 }
 0x17b   : > { %v504_v26 = vpop.trf.xlu1  ;;  %v472_v27 = vpop.trf.xlu0 }
 0x17c   : > { %630 = vst [vmem:[%s1230_s17 + $0x1d8] sm:$0xff] %v504_v26  ;;  %598 = vst [vmem:[%s1230_s17 + $0xd8] sm:$0xff] %v472_v27 }
 0x17f   : > { %v505_v28 = vpop.trf.xlu1  ;;  %v473_v29 = vpop.trf.xlu0 }
 0x180   : > { %632 = vst [vmem:[%s1230_s17 + $0x1e8] sm:$0xff] %v505_v28  ;;  %600 = vst [vmem:[%s1230_s17 + $0xe8] sm:$0xff] %v473_v29 }
 0x183   : > { %v506_v30 = vpop.trf.xlu1  ;;  %v474_v31 = vpop.trf.xlu0 }
 0x184   : > { %634 = vst [vmem:[%s1230_s17 + $0x1f8] sm:$0xff] %v506_v30  ;;  %602 = vst [vmem:[%s1230_s17 + $0xf8] sm:$0xff] %v474_v31 }
 0x187   : > { %v555_v32 = vpop.trf.xlu1  ;;  %v523_v33 = vpop.trf.xlu0 }
 0x188   : > { %668 = vst [vmem:[%s1230_s17 + $0x308] sm:$0xff] %v555_v32  ;;  %636 = vst [vmem:[%s1230_s17 + $0x208] sm:$0xff] %v523_v33 }
 0x18b   : > { %v556_v34 = vpop.trf.xlu1  ;;  %v524_v35 = vpop.trf.xlu0 }
 0x18c   : > { %670 = vst [vmem:[%s1230_s17 + $0x318] sm:$0xff] %v556_v34  ;;  %638 = vst [vmem:[%s1230_s17 + $0x218] sm:$0xff] %v524_v35 }
 0x18f   : > { %v557_v36 = vpop.trf.xlu1  ;;  %v525_v37 = vpop.trf.xlu0 }
 0x190   : > { %672 = vst [vmem:[%s1230_s17 + $0x328] sm:$0xff] %v557_v36  ;;  %640 = vst [vmem:[%s1230_s17 + $0x228] sm:$0xff] %v525_v37 }
 0x193   : > { %v558_v38 = vpop.trf.xlu1  ;;  %v526_v39 = vpop.trf.xlu0 }
 0x194   : > { %674 = vst [vmem:[%s1230_s17 + $0x338] sm:$0xff] %v558_v38  ;;  %642 = vst [vmem:[%s1230_s17 + $0x238] sm:$0xff] %v526_v39 }
 0x197   : > { %v559_v40 = vpop.trf.xlu1  ;;  %v527_v41 = vpop.trf.xlu0 }
 0x198   : > { %676 = vst [vmem:[%s1230_s17 + $0x348] sm:$0xff] %v559_v40  ;;  %644 = vst [vmem:[%s1230_s17 + $0x248] sm:$0xff] %v527_v41 }
 0x19b   : > { %v560_v42 = vpop.trf.xlu1  ;;  %v528_v43 = vpop.trf.xlu0 }
 0x19c   : > { %678 = vst [vmem:[%s1230_s17 + $0x358] sm:$0xff] %v560_v42  ;;  %646 = vst [vmem:[%s1230_s17 + $0x258] sm:$0xff] %v528_v43 }
 0x19f   : > { %v561_v44 = vpop.trf.xlu1  ;;  %v529_v45 = vpop.trf.xlu0 }
 0x1a0   : > { %680 = vst [vmem:[%s1230_s17 + $0x368] sm:$0xff] %v561_v44  ;;  %648 = vst [vmem:[%s1230_s17 + $0x268] sm:$0xff] %v529_v45 }
 0x1a3   : > { %v562_v46 = vpop.trf.xlu1  ;;  %v530_v47 = vpop.trf.xlu0 }
 0x1a4   : > { %682 = vst [vmem:[%s1230_s17 + $0x378] sm:$0xff] %v562_v46  ;;  %650 = vst [vmem:[%s1230_s17 + $0x278] sm:$0xff] %v530_v47 }
 0x1a7   : > { %v563_v48 = vpop.trf.xlu1  ;;  %v531_v49 = vpop.trf.xlu0 }
 0x1a8   : > { %684 = vst [vmem:[%s1230_s17 + $0x388] sm:$0xff] %v563_v48  ;;  %652 = vst [vmem:[%s1230_s17 + $0x288] sm:$0xff] %v531_v49 }
 0x1ab   : > { %v564_v50 = vpop.trf.xlu1  ;;  %v532_v51 = vpop.trf.xlu0 }
 0x1ac   : > { %686 = vst [vmem:[%s1230_s17 + $0x398] sm:$0xff] %v564_v50  ;;  %654 = vst [vmem:[%s1230_s17 + $0x298] sm:$0xff] %v532_v51 }
 0x1af   : > { %v565_v52 = vpop.trf.xlu1  ;;  %v533_v53 = vpop.trf.xlu0 }
 0x1b0   : > { %688 = vst [vmem:[%s1230_s17 + $0x3a8] sm:$0xff] %v565_v52  ;;  %656 = vst [vmem:[%s1230_s17 + $0x2a8] sm:$0xff] %v533_v53 }
 0x1b3   : > { %v566_v54 = vpop.trf.xlu1  ;;  %v534_v55 = vpop.trf.xlu0 }
 0x1b4   : > { %690 = vst [vmem:[%s1230_s17 + $0x3b8] sm:$0xff] %v566_v54  ;;  %658 = vst [vmem:[%s1230_s17 + $0x2b8] sm:$0xff] %v534_v55 }
 0x1b7   : > { %v567_v56 = vpop.trf.xlu1  ;;  %v535_v57 = vpop.trf.xlu0 }
 0x1b8   : > { %692 = vst [vmem:[%s1230_s17 + $0x3c8] sm:$0xff] %v567_v56  ;;  %660 = vst [vmem:[%s1230_s17 + $0x2c8] sm:$0xff] %v535_v57 }
 0x1bb   : > { %v568_v58 = vpop.trf.xlu1  ;;  %v536_v59 = vpop.trf.xlu0 }
 0x1bc   : > { %694 = vst [vmem:[%s1230_s17 + $0x3d8] sm:$0xff] %v568_v58  ;;  %662 = vst [vmem:[%s1230_s17 + $0x2d8] sm:$0xff] %v536_v59 }
 0x1be   : > { %706 = sbr.rel (!%p1085_p9) target bundleno = 481 (0x1e1), region = 32 }
 0x1bf   : > { %v569_v60 = vpop.trf.xlu1  ;;  %v537_v61 = vpop.trf.xlu0 }
 0x1c0   : > { %696 = vst [vmem:[%s1230_s17 + $0x3e8] sm:$0xff] %v569_v60  ;;  %664 = vst [vmem:[%s1230_s17 + $0x2e8] sm:$0xff] %v537_v61 }
 0x1c3   : > { %v570_v62 = vpop.trf.xlu1  ;;  %v538_v63 = vpop.trf.xlu0 }
 0x1c4   : > { %698 = vst [vmem:[%s1230_s17 + $0x3f8] sm:$0xff] %v570_v62  ;;  %666 = vst [vmem:[%s1230_s17 + $0x2f8] sm:$0xff] %v538_v63 }
 0x1c5   : > { %s1508_s3 = smov (!%p710_p8, %s709_s3), 64 }
 0x1c6   : > { %s1426_s4 = sshll.u32 %s1508_s3, 8 }
 0x1c7   : > { %s715_s5 = ssub.s32 16384, %s1426_s4 }
 0x1c8   : > { %716 = vsyncadd %s700_s25, %s715_s5  ;;  %p838_p12 = scmp.ne.s32.totalorder %s1426_s4, 0  ;;  %s850_s18 = sshll.u32 %s1012_s9, 14 }
 0x1c9   : > { %s1436_s22 = scalar_lea.hbm %s1491_s1, %s850_s18  ;;  %s725_s23 = sshll.u32 %s1230_s17, 4  ;;  %s1439_s23 = int_to_ptr.vmem [resolvable:$true] %s725_s23 }
 0x1ca   : > { %s938_s26 = scalar_lea.vmem %s1439_s23, %s1426_s4  ;;  %s1025_s28 = smov [#allocation5]  }
 0x1cb   : > { %p939_p9 = scmp.ne.s32.totalorder %s1439_s23, %s938_s26  ;;  %s942_s29 = sshll.u32 %s1025_s28, 4  ;;  %s943_s29 = int_to_ptr.vmem [resolvable:$false] %s942_s29 }
 0x1cc   : > { %s944_s9 = scalar_lea.vmem %s943_s29, 32768  ;;  %p945_p13 = scmp.lt.s32.totalorder %s1439_s23, %s943_s29 }
 0x1cd   : > { %p940_p0 = pnand %p939_p9, %p838_p12  ;;  %p946_p1 = scmp.lt.s32.totalorder %s944_s9, %s938_s26 }
 0x1cf   : > { %p941_p10 = pneg %p940_p0  ;;  %p947_p2 = por %p946_p1, %p945_p13 }
 0x1d1   : > { %p948_p4 = pnand %p947_p2, %p941_p10 }
 0x1d3   : > { %951 = shalt.err (!%p948_p4)
}
 0x1d4   : > { %s952_s30 = scalar_lea.hbm %s1436_s22, %s1426_s4  ;;  %s956_s15 = scalar_lea.hbm %s1491_s1, 20480 }
 0x1d5   : > { %p953_p5 = scmp.ne.s32.totalorder %s1436_s22, %s952_s30  ;;  %p957_p7 = scmp.lt.u32.totalorder %s1436_s22, %s1491_s1 }
 0x1d6   : > { %p958_p11 = scmp.lt.u32.totalorder %s956_s15, %s952_s30  ;;  %p960_p9 = scmp.lt.u32.totalorder %s952_s30, %s1436_s22 }
 0x1d7   : > { %p954_p6 = pnand %p953_p5, %p838_p12 }
 0x1d8   : > { %p959_p8 = por %p958_p11, %p957_p7 }
 0x1d9   : > { %p955_p3 = pneg %p954_p6 }
 0x1da   : > { %p961_p0 = por %p960_p9, %p959_p8 }
 0x1dc   : > { %p962_p10 = pnand %p961_p0, %p955_p3 }
 0x1de   : > { %965 = shalt.err (!%p962_p10)
}
 0x1df   : > { %s1026_s27 = smov 256   ;;  %s1027_s3 = smov 16  }
 0x1e0   : > { %731 = dma.vmem_to_hbm [thread:$0]  (%p838_p12), %s1439_s23, %s1426_s4, %s1436_s22, %s700_s25, %s1026_s27, %s1026_s27, %s1027_s3  }
 0x1e1 PF: > { %s740_s5 = sand.u32 1, %s1000_s6   ;;  %p1496_p13 = scmp.ne.s32.totalorder %s1495_s20, 0 }
 0x1e2   : > { %p1497_p1 = scmp.ge.s32.totalorder %s1020_s11, 2  ;;  %s741_s18 = scalar_lea.sflag [#allocation4], %s740_s5 }
 0x1e4   : > { %p854_p2 = pnand %p1497_p1, %p1496_p13 }
 0x1e6   : > { %995 = dma.done.wait (!%p854_p2), %s741_s18, 16384  }
 0x1e7   : > { %997 = vsyncadd (!%p854_p2), %s741_s18, 4294950912  ;;  %s17_s11 = sadd.s32 1, %s1020_s11   ;;  %s1498_s6 = smov %s1004_s7 }
 0x1e8   : > { %p14_p4 = scmp.ge.s32.totalorder %s17_s11, 4   ;;  %s1499_s7 = smov %s1008_s8 }
 0x1e9   : > { %s1500_s8 = smov %s1090_s19  ;;  %s1501_s9 = smov %s1016_s10 }
 0x1ea   : > { %s1502_s10 = smov %s1504_s14  ;;  %16 = sbr.rel (!%p14_p4) target bundleno = 6 (0x6), region = 69 }
 0x1f1   :  { %746 = vsyncpa [#allocation3], 1 }
 0x1f2   :  { %748 = vsyncpa [#allocation3 + $0x1], 1 }
 0x1f3   :  { %749 = vsyncpa [#allocation4], 1 }
 0x1f4   :  { %751 = vsyncpa [#allocation4 + $0x1], 1 }

</bundles_post_ra>
